<compile_context>
chip_gen: v5e
topology: v5e:2x2
jax: 0.10.0
libtpu: 0.0.40
codegen_flags: <defaults>
</compile_context>

<pallas_src>
import math
import numpy as np
import jax
import jax.numpy as jnp
from jax.experimental import pallas as pl
from jax.experimental.pallas import tpu as pltpu

IMAGENET_MEAN = np.array([0.485, 0.456, 0.406], dtype=np.float32)
IMAGENET_STD = np.array([0.229, 0.224, 0.225], dtype=np.float32)


def _nearest_indices(out_size: int, in_size: int) -> np.ndarray:
    # PyTorch F.interpolate(mode='nearest'): src = floor(dst * in / out)
    return np.floor(np.arange(out_size) * in_size / out_size).astype(np.int64)


def _selection_matrix(h_in, w_in, h_out, w_out) -> np.ndarray:
    # One-hot S with S[h*w_in + w, o*w_out + p] = 1 iff (h, w) == (idx_h[o], idx_w[p]),
    # so resized_flat = x_flat @ S performs the nearest-neighbor resize exactly on the MXU.
    idx_h = _nearest_indices(h_out, h_in)
    idx_w = _nearest_indices(w_out, w_in)
    s_h = np.zeros((h_out, h_in), dtype=np.float32)
    s_h[np.arange(h_out), idx_h] = 1.0
    s_w = np.zeros((w_in, w_out), dtype=np.float32)
    s_w[idx_w, np.arange(w_out)] = 1.0
    return np.kron(s_h.T, s_w)  # (h_in*w_in, h_out*w_out)


def _choose_pack(hw_out: int) -> int:
    # Smallest k with (k * hw_out) % 128 == 0 so output rows are lane-dense.
    if hw_out % 128 == 0:
        return 1
    k = 128 // math.gcd(hw_out, 128)
    return k if k <= 8 else 1  # avoid huge plane padding for awkward sizes


def _invariant_spec(block_shape, index_map):
    # Grid-invariant operand: single-buffer it when this JAX build supports pipeline_mode.
    try:
        spec = pl.BlockSpec(block_shape, index_map,
                            pipeline_mode=pl.Buffered(buffer_count=1))
        return spec, 1
    except (TypeError, ValueError, AttributeError):
        return pl.BlockSpec(block_shape, index_map), 2


def _choose_block_rows(rows, per_row_bytes, fixed_bytes, budget_bytes):
    # rows is a multiple of 8, so candidates are its multiple-of-8 divisors.
    cands = [d for d in range(8, rows + 1, 8) if rows % d == 0]
    fitting = [d for d in cands if fixed_bytes + d * per_row_bytes <= budget_bytes]
    if not fitting:
        return cands[0]
    best = max(fitting)
    if rows // best < 2:
        # Prefer >=2 grid steps (v7x megacore sharding of the "parallel" axis)
        # when a block at least half as large still fits the budget.
        multi = [d for d in fitting if rows // d >= 2]
        if multi and 2 * max(multi) >= best:
            best = max(multi)
    return best


def _preprocess_kernel(x_ref, sel_ref, sb_ref, o_ref):
    # x_ref:   (TB, K*HW_IN)        packed input planes
    # sel_ref: (K*HW_IN, K*HW_OUT)  block-diagonal one-hot resize matrix
    # sb_ref:  (TB, 2*K*HW_OUT)     [scale | bias], lane-expanded per plane
    # o_ref:   (TB, K*HW_OUT)       lane-dense packed output planes
    resized = jnp.dot(x_ref[...], sel_ref[...], preferred_element_type=jnp.float32)
    kho = o_ref.shape[-1]
    sb = sb_ref[...]
    o_ref[...] = resized * sb[:, :kho] + sb[:, kho:]


def preprocess(x: jax.Array, input_shape) -> jax.Array:
    """x: (N, 3, H_in, W_in) float32 in [0, 255]. Returns (N, 3, H_out, W_out)."""
    n, c, h_in, w_in = x.shape
    h_out, w_out = int(input_shape[2]), int(input_shape[3])
    assert c == 3, "Preprocess normalization is defined for 3 channels"
    nc = n * c
    hw_in, hw_out = h_in * w_in, h_out * w_out

    # --- packing so the output rows are lane-dense (>=128 lanes) ---------------
    k = _choose_pack(hw_out)
    rows = -(-nc // k)                    # ceil
    rows_padded = -(-rows // 8) * 8       # sublane-friendly
    planes_padded = rows_padded * k

    # --- selection matrix (block-diagonal over the k packed planes) -----------
    sel_bytes = 4 * (k * hw_in) * (k * hw_out)
    if sel_bytes > (16 << 20):
        # TODO(synk): factorize into a (w_in, w_out) matmul + H row-gather for large images.
        raise NotImplementedError("combined selection matrix too large; factorize the resize")
    sel_base = _selection_matrix(h_in, w_in, h_out, w_out)
    sel_np = np.zeros((k * hw_in, k * hw_out), dtype=np.float32)
    for j in range(k):
        sel_np[j * hw_in:(j + 1) * hw_in, j * hw_out:(j + 1) * hw_out] = sel_base
    sel = jnp.asarray(sel_np)

    # --- fold /255 and (x-mean)/std into lane-expanded merged scale|bias ------
    scale_c = (1.0 / (255.0 * IMAGENET_STD)).astype(np.float32)
    bias_c = (-IMAGENET_MEAN / IMAGENET_STD).astype(np.float32)
    scale_p = np.zeros((planes_padded,), np.float32)
    bias_p = np.zeros((planes_padded,), np.float32)
    scale_p[:nc] = np.tile(scale_c, n)    # plane p -> channel p % 3
    bias_p[:nc] = np.tile(bias_c, n)
    sb = jnp.asarray(np.concatenate(
        [np.repeat(scale_p, hw_out).reshape(rows_padded, k * hw_out),
         np.repeat(bias_p, hw_out).reshape(rows_padded, k * hw_out)], axis=1))

    # --- pack the input planes (free reshape; pad only if needed) --------------
    x_flat = x.astype(jnp.float32).reshape(nc, hw_in)
    if planes_padded > nc:
        x_flat = jnp.pad(x_flat, ((0, planes_padded - nc), (0, 0)))
    x_packed = x_flat.reshape(rows_padded, k * hw_in)

    # --- tile-size / VMEM budgeting (generation-aware) -------------------------
    sel_spec, sel_bufs = _invariant_spec((k * hw_in, k * hw_out), lambda i: (0, 0))
    try:
        vmem_cap = int(pltpu.get_tpu_info().vmem_capacity_bytes)
    except Exception:
        vmem_cap = 64 << 20  # conservative (v7x per-core VMEM)
    budget = min(24 << 20, vmem_cap // 3)
    per_row_bytes = 2 * 4 * (k * hw_in + k * hw_out + 2 * k * hw_out)  # dbl-buffered in/out/sb
    tb = _choose_block_rows(rows_padded, per_row_bytes, sel_bufs * sel_bytes, budget)
    nb = rows_padded // tb

    footprint = sel_bufs * sel_bytes + tb * per_row_bytes + (1 << 20)
    vmem_limit = int(min(vmem_cap - (4 << 20), max(footprint + (4 << 20), 32 << 20)))

    flops = 2 * rows_padded * (k * hw_in) * (k * hw_out) + 2 * rows_padded * (k * hw_out)
    bytes_accessed = 4 * (rows_padded * k * hw_in + (k * hw_in) * (k * hw_out)
                          + 3 * rows_padded * k * hw_out)

    out = pl.pallas_call(
        _preprocess_kernel,
        out_shape=jax.ShapeDtypeStruct((rows_padded, k * hw_out), jnp.float32),
        grid=(nb,),
        in_specs=[
            pl.BlockSpec((tb, k * hw_in), lambda i: (i, 0)),
            sel_spec,
            pl.BlockSpec((tb, 2 * k * hw_out), lambda i: (i, 0)),
        ],
        out_specs=pl.BlockSpec((tb, k * hw_out), lambda i: (i, 0)),
        compiler_params=pltpu.CompilerParams(
            dimension_semantics=("parallel",),
            vmem_limit_bytes=vmem_limit),
        cost_estimate=pl.CostEstimate(
            flops=int(flops), transcendentals=0, bytes_accessed=int(bytes_accessed)),
    )(x_packed, sel, sb)

    # free reshapes back to NCHW (padded planes sliced off)
    return out.reshape(planes_padded, hw_out)[:nc].reshape(n, c, h_out, w_out)


def _reference(x: jax.Array, input_shape) -> jax.Array:
    n, c, h_in, w_in = x.shape
    h_out, w_out = int(input_shape[2]), int(input_shape[3])
    idx_h = jnp.asarray(_nearest_indices(h_out, h_in))
    idx_w = jnp.asarray(_nearest_indices(w_out, w_in))
    r = x[:, :, idx_h, :][:, :, :, idx_w]
    r = r / 255.0
    mean = jnp.asarray(IMAGENET_MEAN).reshape(1, 3, 1, 1)
    std = jnp.asarray(IMAGENET_STD).reshape(1, 3, 1, 1)
    return (r - mean) / std


if __name__ == "__main__":
    key = jax.random.PRNGKey(0)
    # module was built as Preprocess(input_shape=[1, 3, 8, 8]); input image is 16x16
    input_shape = [1, 3, 8, 8]
    x = jax.random.uniform(key, (2, 3, 16, 16), dtype=jnp.float32) * 255.0

    out = jax.block_until_ready(preprocess(x, input_shape))

    ref = _reference(x, input_shape)
    if not np.allclose(np.asarray(out), np.asarray(ref), atol=1e-5, rtol=1e-5):
        raise AssertionError("Pallas kernel output does not match reference")

    print("KERNEL_OK")
</pallas_src>

<mosaic_0001>
module attributes {stable_mosaic.version = 11 : i64} {
  func.func @_preprocess_kernel(%arg0: i32, %arg1: memref<8x512xf32, #tpu.memory_space<vmem>>, %arg2: memref<512x128xf32, #tpu.memory_space<vmem>>, %arg3: memref<8x256xf32, #tpu.memory_space<vmem>>, %arg4: memref<8x128xf32, #tpu.memory_space<vmem>>) attributes {dimension_semantics = [#tpu.dimension_semantics<parallel>], iteration_bounds = array<i64: 1>, scalar_prefetch = 0 : i64, scratch_operands = 0 : i64, tpu.core_type = #tpu.core_type<tc>, window_params = [{transform_indices = @transform_0, window_bounds = array<i64: 8, 512>}, {pipeline_mode = #tpu.pipeline_mode<synchronous>, transform_indices = @transform_1, window_bounds = array<i64: 512, 128>}, {transform_indices = @transform_2, window_bounds = array<i64: 8, 256>}, {transform_indices = @transform_3, window_bounds = array<i64: 8, 128>}]} {
    %c0 = arith.constant 0 : index
    %c0_0 = arith.constant 0 : index
    %0 = vector.load %arg1[%c0, %c0_0] : memref<8x512xf32, #tpu.memory_space<vmem>>, vector<8x512xf32>
    %c0_1 = arith.constant 0 : index
    %c0_2 = arith.constant 0 : index
    %1 = vector.load %arg2[%c0_1, %c0_2] : memref<512x128xf32, #tpu.memory_space<vmem>>, vector<512x128xf32>
    %cst = arith.constant dense<0.000000e+00> : vector<8x128xf32>
    %2 = tpu.matmul %0, %1, %cst {dimension_numbers = #tpu.dot_dimension_numbers<[1], [0], [0], [1], [0, 0, 1, 1], [], []>} : vector<8x512xf32>, vector<512x128xf32>, vector<8x128xf32> -> vector<8x128xf32>
    %c0_3 = arith.constant 0 : index
    %c0_4 = arith.constant 0 : index
    %3 = vector.load %arg3[%c0_3, %c0_4] : memref<8x256xf32, #tpu.memory_space<vmem>>, vector<8x256xf32>
    %4 = vector.extract_strided_slice %3 {offsets = [0, 0], sizes = [8, 128], strides = [1, 1]} : vector<8x256xf32> to vector<8x128xf32>
    %5 = arith.mulf %2, %4 : vector<8x128xf32>
    %6 = vector.extract_strided_slice %3 {offsets = [0, 128], sizes = [8, 128], strides = [1, 1]} : vector<8x256xf32> to vector<8x128xf32>
    %7 = arith.addf %5, %6 : vector<8x128xf32>
    %c0_5 = arith.constant 0 : index
    %c0_6 = arith.constant 0 : index
    %8 = vector.load %arg4[%c0_5, %c0_6] : memref<8x128xf32, #tpu.memory_space<vmem>>, vector<8x128xf32>
    tpu.vector_store %arg4[%c0_5, %c0_6], %7 {strides = array<i32>} : memref<8x128xf32, #tpu.memory_space<vmem>>, vector<8x128xf32>,
    return
  }
  func.func @transform_0(%arg0: i32) -> (i32, i32) {
    %c0_i32 = arith.constant 0 : i32
    %c0_i32_0 = arith.constant 0 : i32
    return %arg0, %c0_i32 : i32, i32
  }
  func.func @transform_1(%arg0: i32) -> (i32, i32) {
    %c0_i32 = arith.constant 0 : i32
    %c0_i32_0 = arith.constant 0 : i32
    %c0_i32_1 = arith.constant 0 : i32
    return %c0_i32, %c0_i32_0 : i32, i32
  }
  func.func @transform_2(%arg0: i32) -> (i32, i32) {
    %c0_i32 = arith.constant 0 : i32
    %c0_i32_0 = arith.constant 0 : i32
    return %arg0, %c0_i32 : i32, i32
  }
  func.func @transform_3(%arg0: i32) -> (i32, i32) {
    %c0_i32 = arith.constant 0 : i32
    %c0_i32_0 = arith.constant 0 : i32
    return %arg0, %c0_i32 : i32, i32
  }
}

</mosaic_0001>

<bundles_post_ra>
// kernel: tpu_custom_call.1
= control target key start
LH: loop header
LB: loop body
LE: loop exit
PB: predicated region body
PF: predicated region fallthrough
CT: control target
= control target key end

     0   :  { %8 = vsyncpa [#allocation3], 0  ;;  %s375_s0 = inlined_call_operand.hbm [shape: f32[8,512], index: 0, kind: input, shape index: {}]   ;;  %s376_s1 = inlined_call_operand.hbm [shape: f32[512,128], index: 1, kind: input, shape index: {}]   ;;  %s377_s2 = inlined_call_operand.hbm [shape: f32[8,256], index: 2, kind: input, shape index: {}]   ;;  %s378_s3 = inlined_call_operand.hbm [shape: f32[8,128], index: 3, kind: output, shape index: {}]  }
   0x1   :  { %9 = vsyncpa [#allocation6], 0  ;;  %s26_s14 = sshll.u32 %s376_s1, 4  ;;  %s27_s14 = int_to_ptr.hbm [resolvable:$true] %s26_s14 }
   0x2   :  { %10 = vsyncpa [#allocation4], 0  ;;  %s337_s15 = smov [#allocation5]   ;;  %s16_s19 = sshll.u32 %s375_s0, 4  ;;  %s17_s19 = int_to_ptr.hbm [resolvable:$true] %s16_s19 }
   0x3   :  { %s28_s16 = sshll.u32 %s337_s15, 4  ;;  %s338_s20 = smov 128   ;;  %s29_s16 = int_to_ptr.vmem [resolvable:$true] %s28_s16 }
   0x4   :  { %s339_s21 = smov 8   ;;  %s340_s22 = smov [#allocation2]  }
   0x5   :  { %34 = dma.hbm_to_vmem [thread:$0]  %s27_s14, 8192, %s29_s16, [#allocation6], %s338_s20, %s338_s20, %s339_s21  }
   0x6   :  { %s18_s23 = sshll.u32 %s340_s22, 4  ;;  %s40_s26 = sshll.u32 %s377_s2, 4  ;;  %s19_s23 = int_to_ptr.vmem [resolvable:$true] %s18_s23  ;;  %s41_s26 = int_to_ptr.hbm [resolvable:$true] %s40_s26 }
   0x7   :  { %21 = dma.hbm_to_vmem [thread:$0]  %s17_s19, 512, %s19_s23, [#allocation3]  }
   0x8   :  { %s341_s1 = smov [#allocation7]  }
   0x9   :  { %s42_s27 = sshll.u32 %s341_s1, 4  ;;  %s43_s27 = int_to_ptr.vmem [resolvable:$true] %s42_s27 }
   0xa   :  { %45 = dma.hbm_to_vmem [thread:$0]  %s41_s26, 256, %s43_s27, [#allocation6]  }
   0xb   :  { %331 = dma.done.wait [#allocation3], 512  }
   0xc   :  { %332 = vsyncadd [#allocation3], 4294966784 }
   0xd   :  { %333 = dma.done.wait [#allocation6], 8448  }
   0xe   :  { %334 = vsyncadd [#allocation6], 4294958848  ;;  %v109_v0 = vld [vmem:[#allocation5 + $0x178] sm:$0xff]  ;;  %v108_v1 = vld [vmem:[#allocation5 + $0x170] sm:$0xff]  ;;  %s342_s0 = smov [#allocation8]   ;;  %s218_s30 = sshll.u32 %s378_s3, 4  ;;  %s219_s30 = int_to_ptr.hbm [resolvable:$true] %s218_s30 }
   0xf   :  { %v125_v2 = vld [vmem:[#allocation5 + $0x1f8] sm:$0xff]  ;;  %166 = vmatpush.msra.mxu2 %v109_v0  ;;  %v107_v5 = vld [vmem:[#allocation5 + $0x168] sm:$0xff]  ;;  %v124_v6 = vld [vmem:[#allocation5 + $0x1f0] sm:$0xff]  ;;  %s216_s2 = sshll.u32 %s342_s0, 4  ;;  %s217_s2 = int_to_ptr.vmem [resolvable:$true] %s216_s2 }
  0x10   :  { %186 = vmatpush.msra.mxu3 %v125_v2  ;;  %v77_v3 = vld [vmem:[#allocation5 + $0x78] sm:$0xff]  ;;  %v76_v7 = vld [vmem:[#allocation5 + $0x70] sm:$0xff]  ;;  %v123_v9 = vld [vmem:[#allocation5 + $0x1e8] sm:$0xff] }
  0x11   :  { %v93_v4 = vld [vmem:[#allocation5 + $0xf8] sm:$0xff]  ;;  %126 = vmatpush.msra.mxu0 %v77_v3  ;;  %v92_v8 = vld [vmem:[#allocation5 + $0xf0] sm:$0xff]  ;;  %167 = vmatpush.msra.mxu2 %v108_v1  ;;  %v75_v10 = vld [vmem:[#allocation5 + $0x68] sm:$0xff] }
  0x12   :  { %146 = vmatpush.msra.mxu1 %v93_v4  ;;  %187 = vmatpush.msra.mxu3 %v124_v6  ;;  %v106_v11 = vld [vmem:[#allocation5 + $0x160] sm:$0xff]  ;;  %v91_v12 = vld [vmem:[#allocation5 + $0xe8] sm:$0xff]  ;;  %v105_v16 = vld [vmem:[#allocation5 + $0x158] sm:$0xff] }
  0x13   :  { %127 = vmatpush.msra.mxu0 %v76_v7  ;;  %v122_v13 = vld [vmem:[#allocation5 + $0x1e0] sm:$0xff]  ;;  %168 = vmatpush.msra.mxu2 %v107_v5  ;;  %v121_v17 = vld [vmem:[#allocation5 + $0x1d8] sm:$0xff]  ;;  %v104_v20 = vld [vmem:[#allocation5 + $0x150] sm:$0xff] }
  0x14   :  { %147 = vmatpush.msra.mxu1 %v92_v8  ;;  %188 = vmatpush.msra.mxu3 %v123_v9  ;;  %v74_v14 = vld [vmem:[#allocation5 + $0x60] sm:$0xff]  ;;  %v73_v18 = vld [vmem:[#allocation5 + $0x58] sm:$0xff]  ;;  %v120_v21 = vld [vmem:[#allocation5 + $0x1d0] sm:$0xff] }
  0x15   :  { %v90_v15 = vld [vmem:[#allocation5 + $0xe0] sm:$0xff]  ;;  %128 = vmatpush.msra.mxu0 %v75_v10  ;;  %169 = vmatpush.msra.mxu2 %v106_v11  ;;  %v89_v19 = vld [vmem:[#allocation5 + $0xd8] sm:$0xff]  ;;  %v72_v22 = vld [vmem:[#allocation5 + $0x50] sm:$0xff] }
  0x16   :  { %148 = vmatpush.msra.mxu1 %v91_v12  ;;  %189 = vmatpush.msra.mxu3 %v122_v13  ;;  %v88_v23 = vld [vmem:[#allocation5 + $0xd0] sm:$0xff]  ;;  %v103_v24 = vld [vmem:[#allocation5 + $0x148] sm:$0xff]  ;;  %v102_v28 = vld [vmem:[#allocation5 + $0x140] sm:$0xff] }
  0x17   :  { %129 = vmatpush.msra.mxu0 %v74_v14  ;;  %170 = vmatpush.msra.mxu2 %v105_v16  ;;  %v119_v25 = vld [vmem:[#allocation5 + $0x1c8] sm:$0xff]  ;;  %v118_v29 = vld [vmem:[#allocation5 + $0x1c0] sm:$0xff]  ;;  %v101_v32 = vld [vmem:[#allocation5 + $0x138] sm:$0xff] }
  0x18   :  { %149 = vmatpush.msra.mxu1 %v90_v15  ;;  %190 = vmatpush.msra.mxu3 %v121_v17  ;;  %v71_v26 = vld [vmem:[#allocation5 + $0x48] sm:$0xff]  ;;  %v70_v30 = vld [vmem:[#allocation5 + $0x40] sm:$0xff]  ;;  %v117_v33 = vld [vmem:[#allocation5 + $0x1b8] sm:$0xff] }
  0x19   :  { %130 = vmatpush.msra.mxu0 %v73_v18  ;;  %171 = vmatpush.msra.mxu2 %v104_v20  ;;  %v87_v27 = vld [vmem:[#allocation5 + $0xc8] sm:$0xff]  ;;  %v86_v31 = vld [vmem:[#allocation5 + $0xc0] sm:$0xff]  ;;  %v69_v34 = vld [vmem:[#allocation5 + $0x38] sm:$0xff] }
  0x1a   :  { %150 = vmatpush.msra.mxu1 %v89_v19  ;;  %191 = vmatpush.msra.mxu3 %v120_v21  ;;  %v85_v35 = vld [vmem:[#allocation5 + $0xb8] sm:$0xff]  ;;  %v100_v36 = vld [vmem:[#allocation5 + $0x130] sm:$0xff]  ;;  %v99_v40 = vld [vmem:[#allocation5 + $0x128] sm:$0xff] }
  0x1b   :  { %131 = vmatpush.msra.mxu0 %v72_v22  ;;  %172 = vmatpush.msra.mxu2 %v103_v24  ;;  %v116_v37 = vld [vmem:[#allocation5 + $0x1b0] sm:$0xff]  ;;  %v115_v41 = vld [vmem:[#allocation5 + $0x1a8] sm:$0xff]  ;;  %v98_v44 = vld [vmem:[#allocation5 + $0x120] sm:$0xff] }
  0x1c   :  { %151 = vmatpush.msra.mxu1 %v88_v23  ;;  %192 = vmatpush.msra.mxu3 %v119_v25  ;;  %v68_v38 = vld [vmem:[#allocation5 + $0x30] sm:$0xff]  ;;  %v67_v42 = vld [vmem:[#allocation5 + $0x28] sm:$0xff]  ;;  %v114_v45 = vld [vmem:[#allocation5 + $0x1a0] sm:$0xff] }
  0x1d   :  { %132 = vmatpush.msra.mxu0 %v71_v26  ;;  %173 = vmatpush.msra.mxu2 %v102_v28  ;;  %v84_v39 = vld [vmem:[#allocation5 + $0xb0] sm:$0xff]  ;;  %v83_v43 = vld [vmem:[#allocation5 + $0xa8] sm:$0xff]  ;;  %v66_v46 = vld [vmem:[#allocation5 + $0x20] sm:$0xff] }
  0x1e   :  { %152 = vmatpush.msra.mxu1 %v87_v27  ;;  %193 = vmatpush.msra.mxu3 %v118_v29  ;;  %v82_v47 = vld [vmem:[#allocation5 + $0xa0] sm:$0xff]  ;;  %v97_v48 = vld [vmem:[#allocation5 + $0x118] sm:$0xff]  ;;  %v96_v52 = vld [vmem:[#allocation5 + $0x110] sm:$0xff] }
  0x1f   :  { %133 = vmatpush.msra.mxu0 %v70_v30  ;;  %174 = vmatpush.msra.mxu2 %v101_v32  ;;  %v113_v49 = vld [vmem:[#allocation5 + $0x198] sm:$0xff]  ;;  %v112_v53 = vld [vmem:[#allocation5 + $0x190] sm:$0xff]  ;;  %v95_v56 = vld [vmem:[#allocation5 + $0x108] sm:$0xff] }
  0x20   :  { %153 = vmatpush.msra.mxu1 %v86_v31  ;;  %194 = vmatpush.msra.mxu3 %v117_v33  ;;  %v65_v50 = vld [vmem:[#allocation5 + $0x18] sm:$0xff]  ;;  %v64_v54 = vld [vmem:[#allocation5 + $0x10] sm:$0xff]  ;;  %v111_v57 = vld [vmem:[#allocation5 + $0x188] sm:$0xff] }
  0x21   :  { %134 = vmatpush.msra.mxu0 %v69_v34  ;;  %175 = vmatpush.msra.mxu2 %v100_v36  ;;  %v81_v51 = vld [vmem:[#allocation5 + $0x98] sm:$0xff]  ;;  %v80_v55 = vld [vmem:[#allocation5 + $0x90] sm:$0xff]  ;;  %v63_v58 = vld [vmem:[#allocation5 + $0x8] sm:$0xff] }
  0x22   :  { %154 = vmatpush.msra.mxu1 %v85_v35  ;;  %195 = vmatpush.msra.mxu3 %v116_v37  ;;  %v79_v59 = vld [vmem:[#allocation5 + $0x88] sm:$0xff]  ;;  %v94_v60 = vld [vmem:[#allocation5 + $0x100] sm:$0xff]  ;;  %v60_v62 = vld [vmem:[#allocation2 + $0x10] sm:$0xff] }
  0x23   :  { %135 = vmatpush.msra.mxu0 %v68_v38  ;;  %176 = vmatpush.msra.mxu2 %v99_v40  ;;  %v110_v61 = vld [vmem:[#allocation5 + $0x180] sm:$0xff]  ;;  %v61_v63 = vld [vmem:[#allocation2 + $0x18] sm:$0xff]  ;;  %v59_v3 = vld [vmem:[#allocation2 + $0x8] sm:$0xff] }
  0x24   :  { %155 = vmatpush.msra.mxu1 %v84_v39  ;;  %196 = vmatpush.msra.mxu3 %v115_v41  ;;  %v62_v0 = vld [vmem:[#allocation5] sm:$0xff]  ;;  %v207_v12 = vld [vmem:[#allocation7 + $0x8] sm:$0xff] }
  0x25   :  { %136 = vmatpush.msra.mxu0 %v67_v42  ;;  %177 = vmatpush.msra.mxu2 %v98_v44  ;;  %v78_v1 = vld [vmem:[#allocation5 + $0x80] sm:$0xff] }
  0x26   :  { %156 = vmatpush.msra.mxu1 %v83_v43  ;;  %197 = vmatpush.msra.mxu3 %v114_v45  ;;  %v58_v2 = vld [vmem:[#allocation2] sm:$0xff] }
  0x27   :  { %137 = vmatpush.msra.mxu0 %v66_v46  ;;  %178 = vmatpush.msra.mxu2 %v97_v48  ;;  %v206_v10 = vld [vmem:[#allocation7] sm:$0xff] }
  0x28   :  { %157 = vmatpush.msra.mxu1 %v82_v47  ;;  %198 = vmatpush.msra.mxu3 %v113_v49 }
  0x29   :  { %138 = vmatpush.msra.mxu0 %v65_v50  ;;  %179 = vmatpush.msra.mxu2 %v96_v52 }
  0x2a   :  { %158 = vmatpush.msra.mxu1 %v81_v51  ;;  %199 = vmatpush.msra.mxu3 %v112_v53 }
  0x2b   :  { %139 = vmatpush.msra.mxu0 %v64_v54  ;;  %180 = vmatpush.msra.mxu2 %v95_v56 }
  0x2c   :  { %159 = vmatpush.msra.mxu1 %v80_v55  ;;  %200 = vmatpush.msra.mxu3 %v111_v57 }
  0x2d   :  { %140 = vmatpush.msra.mxu0 %v63_v58  ;;  %181 = vmatpush.msra.mxu2 %v94_v60 }
  0x2e   :  { %160 = vmatpush.msra.mxu1 %v79_v59  ;;  %201 = vmatpush.msra.mxu3 %v110_v61 }
  0x2f   :  { %182 = vmatmul.f32.vlgmr.msra.gmra.mxu2 %v60_v62  ;;  %202 = vmatmul.f32.vlgmr.msra.gmra.mxu3 %v61_v63 }
  0x30   :  { %141 = vmatpush.msra.mxu0 %v62_v0  ;;  %161 = vmatpush.msra.mxu1 %v78_v1 }
  0x31   :  { %142 = vmatmul.f32.vlgmr.msra.gmra.mxu0 %v58_v2  ;;  %162 = vmatmul.f32.vlgmr.msra.gmra.mxu1 %v59_v3 }
  0xae   :  { %v143_v4 = vpop.f32.mrf.mxu0  ;;  %v163_v5 = vpop.f32.mrf.mxu1 }
  0xaf   :  { %v164_v6 = vadd.f32 %v163_v5, %v143_v4 }
  0xb2   :  { %v183_v7 = vpop.f32.mrf.mxu2  ;;  %v203_v8 = vpop.f32.mrf.mxu3 }
  0xb3   :  { %v184_v9 = vadd.f32 %v183_v7, %v164_v6 }
  0xb5   :  { %v204_v11 = vadd.f32 %v203_v8, %v184_v9 }
  0xb7   :  { %v208_v13 = vmul.f32 %v206_v10, %v204_v11 }
  0xb9   :  { %v209_v14 = vadd.f32 %v208_v13, %v207_v12 }
  0xbb   :  { %210 = vst [vmem:[#allocation8] sm:$0xff] %v209_v14 }
  0xbc   :  { %221 = dma.vmem_to_hbm [thread:$0]  %s217_s2, 128, %s219_s30, [#allocation4]  }
  0xbd   :  { %335 = dma.done.wait [#allocation4], 128  }
  0xbe   :  { %336 = vsyncadd [#allocation4], 4294967168 }
  0xbf   :  { %226 = vsyncpa [#allocation3], 1 }
  0xc0   :  { %227 = vsyncpa [#allocation6], 1 }
  0xc1   :  { %228 = vsyncpa [#allocation4], 1 }

</bundles_post_ra>
